<compile_context>
chip_gen: v7x
topology: tpu7x:2x2x1
jax: 0.10.0
libtpu: 0.0.40
codegen_flags: <defaults>
</compile_context>

<pallas_src>
import math
from functools import partial

import jax
import jax.numpy as jnp
from jax.experimental import pallas as pl
from jax.experimental.pallas import tpu as pltpu


# ---------------------------------------------------------------------------
# Kernel
# ---------------------------------------------------------------------------
def _rope_kernel(x_ref, cos_ref, sin_a_ref, sin_b_ref, o_ref, *, half):
    """out[p] = x[p]*cos[p] + x[p+half]*sinA[p] + x[p-half]*sinB[p], per 8-row group."""
    tn, tl = x_ref.shape
    # Tables are (8, tl): full-vreg operands, DMA'd once per lane block and kept
    # VMEM-resident across the whole inner row sweep (their index_map is row-invariant).
    cos = cos_ref[...].astype(jnp.float32)
    sin_a = sin_a_ref[...].astype(jnp.float32)
    sin_b = sin_b_ref[...].astype(jnp.float32)
    for g in range(tn // 8):                       # tn is a static multiple of 8
        rows = pl.ds(g * 8, 8)
        x = x_ref[rows, :].astype(jnp.float32)     # (8, tl); f32 math is free (mem-bound)
        # pltpu.roll matches jnp.roll: roll(x, s)[:, p] == x[:, p - s]
        # (hardcoded convention; verified against the pure-JAX reference in __main__).
        x_hi = pltpu.roll(x, tl - half, axis=1)    # x_hi[:, p] == x[:, p + half]
        x_lo = pltpu.roll(x, half, axis=1)         # x_lo[:, p] == x[:, p - half]
        out = x * cos + x_hi * sin_a + x_lo * sin_b
        o_ref[rows, :] = out.astype(o_ref.dtype)   # full-lane-width unmasked store


# ---------------------------------------------------------------------------
# Tiling heuristics (inputs are pre-padded, so no degenerate fallback paths)
# ---------------------------------------------------------------------------
def _largest_divisor_at_most(n: int, cap: int) -> int:
    for k in range(min(n, max(cap, 1)), 0, -1):
        if n % k == 0:
            return k
    return 1


def _choose_tiles(Np, Lp, lane_unit, itemsize, target_block_bytes):
    """Pick (row_tile, lane_tile) for the padded (Np, Lp) view.

    Np % 8 == 0 and Lp % lane_unit == 0 are guaranteed by the wrapper, so tiles are
    always (8,128)-dense and aligned to D-group boundaries (keeps in-block rolls exact).
    """
    n_units = Lp // lane_unit
    max_units = max(1, target_block_bytes // (8 * lane_unit * itemsize))
    lane_tile = _largest_divisor_at_most(n_units, max_units) * lane_unit

    # Cap row groups (bounds the in-kernel unroll) as well as block bytes.
    max_row8 = max(1, min(32, target_block_bytes // (8 * lane_tile * itemsize)))
    row_tile = _largest_divisor_at_most(Np // 8, max_row8) * 8

    lane_steps, row_steps = Lp // lane_tile, Np // row_tile
    if lane_steps * row_steps == 1:
        # Never collapse the problem into a single grid step (one v7x TC would idle).
        if (lane_tile // lane_unit) % 2 == 0:
            lane_tile //= 2
        elif row_tile % 16 == 0:
            row_tile //= 2
    elif lane_steps > 1 and lane_steps % 2 == 1 and (lane_tile // lane_unit) % 2 == 0:
        # Prefer an even outer (megacore-sharded) step count for load balance.
        lane_tile //= 2
    return row_tile, lane_tile


# ---------------------------------------------------------------------------
# Tables
# ---------------------------------------------------------------------------
def make_rope_tables(d: int, max_len: int = 5000, dtype=jnp.float32):
    """sin/cos tables identical to the PyTorch module __init__ (shape (max_len, d))."""
    position = jnp.arange(0, max_len, dtype=jnp.float32)[:, None]
    theta = jnp.exp(jnp.arange(0, d, 2, dtype=jnp.float32) * (-math.log(10000.0) / d))
    theta_repeat = jnp.concatenate([theta, theta], axis=0)
    angles = position * theta_repeat
    return jnp.sin(angles).astype(dtype), jnp.cos(angles).astype(dtype)


def _build_tables(sin_pe, cos_pe, S, D, d, Lp, dtype):
    """(8, Lp) tables with rotate-half sign and pass-through padding folded in."""
    half = d // 2
    sin_s = sin_pe[:S, :].astype(jnp.float32)                                   # (S, d)
    cos_s = cos_pe[:S, :].astype(jnp.float32)                                   # (S, d)
    tail0 = jnp.zeros((S, D - d), jnp.float32)
    cos_t = jnp.concatenate([cos_s, jnp.ones((S, D - d), jnp.float32)], axis=-1)
    sin_a = jnp.concatenate([-sin_s[:, :half], jnp.zeros((S, half), jnp.float32), tail0], -1)
    sin_b = jnp.concatenate([jnp.zeros((S, half), jnp.float32), sin_s[:, half:], tail0], -1)

    def flat(t, pad_value):
        row = t.reshape(1, S * D)
        row = jnp.pad(row, ((0, 0), (0, Lp - S * D)), constant_values=pad_value)
        # 8-sublane pre-broadcast: table operands are full vregs inside the kernel.
        return jnp.broadcast_to(row, (8, Lp)).astype(dtype)

    return flat(cos_t, 1.0), flat(sin_a, 0.0), flat(sin_b, 0.0)


# ---------------------------------------------------------------------------
# Wrapper
# ---------------------------------------------------------------------------
@partial(jax.jit, static_argnames=("d", "target_block_bytes"))
def rotary_positional_embeddings(x: jax.Array, d: int, sin_pe: jax.Array,
                                 cos_pe: jax.Array, *,
                                 target_block_bytes: int = 1 << 20) -> jax.Array:
    """Rotate-half RoPE on the first `d` features of x: [B, H, S, D]."""
    B, H, S, D = x.shape
    assert d % 2 == 0 and 0 < d <= D, "rotary dim must be even and <= head dim"
    assert sin_pe.shape[0] >= S and sin_pe.shape[-1] == d
    assert cos_pe.shape[0] >= S and cos_pe.shape[-1] == d

    half = d // 2
    N, L = B * H, S * D
    itemsize = jnp.dtype(x.dtype).itemsize

    # Harden tiling: pad rows to a multiple of 8 and lanes to a multiple of
    # lcm(D, 128) so blocks stay (8,128)-dense and D-group aligned (rolls stay exact).
    lane_unit = D * 128 // math.gcd(D, 128)
    Np = pl.cdiv(N, 8) * 8
    Lp = pl.cdiv(L, lane_unit) * lane_unit

    x2d = x.reshape(N, L)                              # contiguous flatten -> free
    if (Np, Lp) != (N, L):
        x2d = jnp.pad(x2d, ((0, Np - N), (0, Lp - L)))

    cos_t, sin_a, sin_b = _build_tables(sin_pe, cos_pe, S, D, d, Lp, x.dtype)
    tn, tl = _choose_tiles(Np, Lp, lane_unit, itemsize, target_block_bytes)

    kernel = partial(_rope_kernel, half=half)
    out2d = pl.pallas_call(
        kernel,
        out_shape=jax.ShapeDtypeStruct((Np, Lp), x.dtype),
        grid_spec=pltpu.PrefetchScalarGridSpec(
            num_scalar_prefetch=0,
            # Lane axis OUTER, row axis INNER: the table block index (0, j) is constant
            # across consecutive inner steps, so Pallas skips re-DMAing the tables.
            grid=(Lp // tl, Np // tn),
            in_specs=[
                pl.BlockSpec((tn, tl), lambda j, i: (i, j)),   # x    (streamed)
                pl.BlockSpec((8, tl), lambda j, i: (0, j)),    # cos  (resident per lane block)
                pl.BlockSpec((8, tl), lambda j, i: (0, j)),    # sinA (sign-folded)
                pl.BlockSpec((8, tl), lambda j, i: (0, j)),    # sinB
            ],
            out_specs=pl.BlockSpec((tn, tl), lambda j, i: (i, j)),
        ),
        compiler_params=pltpu.CompilerParams(
            dimension_semantics=("parallel", "parallel"),
            vmem_limit_bytes=32 * 1024 * 1024,
        ),
    )(x2d, cos_t, sin_a, sin_b)

    if (Np, Lp) != (N, L):
        out2d = out2d[:N, :L]
    return out2d.reshape(B, H, S, D)


# ---------------------------------------------------------------------------
# Pure-JAX reference (mirrors the PyTorch forward)
# ---------------------------------------------------------------------------
def rotary_reference(x: jax.Array, d: int, sin_pe: jax.Array,
                     cos_pe: jax.Array) -> jax.Array:
    S = x.shape[2]
    half = d // 2
    x1, x2 = x[..., :d], x[..., d:]
    other = jnp.concatenate([-x1[..., half:], x1[..., :half]], axis=-1)
    x1 = x1 * cos_pe[None, None, :S, :] + other * sin_pe[None, None, :S, :]
    return jnp.concatenate([x1, x2], axis=-1)


if __name__ == "__main__":
    key = jax.random.PRNGKey(0)
    max_len = 64   # small deterministic table (module default is 5000)

    # (B, H, S, D, d, dtype, target_block_bytes, tol)
    configs = [
        (2, 4, 16, 64, 32, jnp.float32, 1 << 20, 1e-5),    # rotary over half the head dim
        (2, 4, 16, 64, 64, jnp.float32, 1 << 20, 1e-5),    # rotary over the full head dim
        (2, 3,  5, 32, 16, jnp.float32, 1 << 20, 1e-5),    # needs row + lane padding
        (8, 4,  8, 32, 32, jnp.float32, 16 << 10, 1e-5),   # small blocks -> multi-row-group body
        (2, 4, 16, 64, 32, jnp.bfloat16, 1 << 20, 4e-2),   # bf16 in, f32 in-kernel math
    ]
    for (B, H, S, D, d, dtype, bb, tol) in configs:
        key, sub = jax.random.split(key)
        x = jax.random.normal(sub, (B, H, S, D), dtype=jnp.float32).astype(dtype)
        sin_pe, cos_pe = make_rope_tables(d, max_len=max_len)

        out = jax.block_until_ready(
            rotary_positional_embeddings(x, d, sin_pe, cos_pe, target_block_bytes=bb))
        ref = rotary_reference(x.astype(jnp.float32), d, sin_pe, cos_pe)

        assert out.shape == x.shape and out.dtype == x.dtype
        assert jnp.allclose(out.astype(jnp.float32), ref, atol=tol, rtol=tol), \
            f"mismatch vs reference for config {(B, H, S, D, d, dtype)}"

    print("KERNEL_OK")
</pallas_src>

<mosaic_0001>
module attributes {stable_mosaic.version = 11 : i64} {
  func.func @_rope_kernel(%arg0: i32, %arg1: i32, %arg2: memref<8x512xf32, #tpu.memory_space<vmem>>, %arg3: memref<8x512xf32, #tpu.memory_space<vmem>>, %arg4: memref<8x512xf32, #tpu.memory_space<vmem>>, %arg5: memref<8x512xf32, #tpu.memory_space<vmem>>, %arg6: memref<8x512xf32, #tpu.memory_space<vmem>>) attributes {dimension_semantics = [#tpu.dimension_semantics<parallel>, #tpu.dimension_semantics<parallel>], iteration_bounds = array<i64: 2, 1>, scalar_prefetch = 0 : i64, scratch_operands = 0 : i64, tpu.core_type = #tpu.core_type<tc>, window_params = [{transform_indices = @transform_0, window_bounds = array<i64: 8, 512>}, {transform_indices = @transform_1, window_bounds = array<i64: 8, 512>}, {transform_indices = @transform_2, window_bounds = array<i64: 8, 512>}, {transform_indices = @transform_3, window_bounds = array<i64: 8, 512>}, {transform_indices = @transform_4, window_bounds = array<i64: 8, 512>}]} {
    %c0 = arith.constant 0 : index
    %c0_0 = arith.constant 0 : index
    %0 = vector.load %arg3[%c0, %c0_0] : memref<8x512xf32, #tpu.memory_space<vmem>>, vector<8x512xf32>
    %c0_1 = arith.constant 0 : index
    %c0_2 = arith.constant 0 : index
    %1 = vector.load %arg4[%c0_1, %c0_2] : memref<8x512xf32, #tpu.memory_space<vmem>>, vector<8x512xf32>
    %c0_3 = arith.constant 0 : index
    %c0_4 = arith.constant 0 : index
    %2 = vector.load %arg5[%c0_3, %c0_4] : memref<8x512xf32, #tpu.memory_space<vmem>>, vector<8x512xf32>
    %c0_5 = arith.constant 0 : index
    %c0_6 = arith.constant 0 : index
    %3 = vector.load %arg2[%c0_5, %c0_6] : memref<8x512xf32, #tpu.memory_space<vmem>>, vector<8x512xf32>
    %c496_i32 = arith.constant 496 : i32
    %4 = tpu.dynamic_rotate %3 by %c496_i32 dim 1 : vector<8x512xf32>, i32 -> vector<8x512xf32>
    %c16_i32 = arith.constant 16 : i32
    %5 = tpu.dynamic_rotate %3 by %c16_i32 dim 1 : vector<8x512xf32>, i32 -> vector<8x512xf32>
    %6 = arith.mulf %3, %0 : vector<8x512xf32>
    %7 = arith.mulf %4, %1 : vector<8x512xf32>
    %8 = arith.addf %6, %7 : vector<8x512xf32>
    %9 = arith.mulf %5, %2 : vector<8x512xf32>
    %10 = arith.addf %8, %9 : vector<8x512xf32>
    %c0_7 = arith.constant 0 : index
    %c0_8 = arith.constant 0 : index
    %11 = vector.load %arg6[%c0_7, %c0_8] : memref<8x512xf32, #tpu.memory_space<vmem>>, vector<8x512xf32>
    tpu.vector_store %arg6[%c0_7, %c0_8], %10 {strides = array<i32>} : memref<8x512xf32, #tpu.memory_space<vmem>>, vector<8x512xf32>,
    return
  }
  func.func @transform_0(%arg0: i32, %arg1: i32) -> (i32, i32) {
    %c0_i32 = arith.constant 0 : i32
    return %arg1, %arg0 : i32, i32
  }
  func.func @transform_1(%arg0: i32, %arg1: i32) -> (i32, i32) {
    %c0_i32 = arith.constant 0 : i32
    %c0_i32_0 = arith.constant 0 : i32
    return %c0_i32, %arg0 : i32, i32
  }
  func.func @transform_2(%arg0: i32, %arg1: i32) -> (i32, i32) {
    %c0_i32 = arith.constant 0 : i32
    %c0_i32_0 = arith.constant 0 : i32
    return %c0_i32, %arg0 : i32, i32
  }
  func.func @transform_3(%arg0: i32, %arg1: i32) -> (i32, i32) {
    %c0_i32 = arith.constant 0 : i32
    %c0_i32_0 = arith.constant 0 : i32
    return %c0_i32, %arg0 : i32, i32
  }
  func.func @transform_4(%arg0: i32, %arg1: i32) -> (i32, i32) {
    %c0_i32 = arith.constant 0 : i32
    return %arg1, %arg0 : i32, i32
  }
}

</mosaic_0001>

<bundles_post_ra>
// kernel: rotary_positional_embeddings.1
= control target key start
LH: loop header
LB: loop body
LE: loop exit
PB: predicated region body
PF: predicated region fallthrough
CT: control target
= control target key end

     0   :  { %s588_s15 = smov 0   ;;  %s590_s16 = smov 0   ;;  %s641_s0 = inlined_call_operand.vmem [shape: f32[8,1024], index: 0, kind: input, shape index: {}]   ;;  %s642_s1 = inlined_call_operand.vmem [shape: f32[8,1024], index: 1, kind: input, shape index: {}]   ;;  %s643_s2 = inlined_call_operand.vmem [shape: f32[8,1024], index: 2, kind: input, shape index: {}]   ;;  %s644_s3 = inlined_call_operand.vmem [shape: f32[8,1024], index: 3, kind: input, shape index: {}]   ;;  %s645_s4 = inlined_call_operand.vmem [shape: f32[8,1024], index: 4, kind: output, shape index: {}]  }
   0x1   :  { %s592_s17 = smov 0  }
   0x2 LB: > { %s26_s18 = sadd.s32 1, %s555_s16  ;;  %p498_p0 = scmp.ge.s32.totalorder %s559_s17, 1  ;;  %s559_s17 = sphi %s592_s17, %s14_s17   ;;  %s555_s16 = sphi %s590_s16, %s647_s16   ;;  %s551_s15 = sphi %s588_s15, %s646_s15  }
   0x3   : > { %p28_p1 = scmp.ge.s32.totalorder %s26_s18, 2  ;;  %p216_p2 = scmp.lt.s32.totalorder %s559_s17, 3 }
   0x5   : > { %s649_s18 = smov (%p28_p1, %s26_s18), 0  ;;  %p217_p3 = pnand %p498_p0, %p216_p2 }
   0x6   : > { %s499_s19 = sshll.u32 (!%p217_p3), %s551_s15, 2  ;;  %s561_s27 = smov (!%p217_p3), 112   ;;  %v327_v12 = vlaneseq (!%p217_p3) }
   0x7   : > { %220 = sbr.rel (%p217_p3) target bundleno = 153 (0x99), region = 36  ;;  %p268_p4 = scmp.lt.s32.totalorder (!%p217_p3), %s499_s19, 7 }
   0x8   : > { %s562_s28 = smov (!%p217_p3), 16   ;;  %v328_v13 = vand.u32 (!%p217_p3), 127, %v327_v12 }
   0xa   : > { %vm329_vm0 = vcmp.lt.s32.totalorder (!%p217_p3), %v328_v13, 112  ;;  %vm342_vm1 = vcmp.lt.s32.totalorder (!%p217_p3), %v328_v13, 16 }
   0xe   : > { %s651_s19 = smov (!%p268_p4, %s499_s19), 7 }
   0xf   : > { %s606_s20 = sshll.u32 %s651_s19, 3 }
  0x10   : > { %s273_s23 = scalar_lea.vmem %s641_s0, %s606_s20  ;;  %s279_s26 = scalar_lea.vmem %s642_s1, %s606_s20 }
  0x11   : > { %v305_v0 = vld [vmem:[%s279_s26 + $0x10] sm:$0xff]  ;;  %v303_v2 = vld [vmem:[%s279_s26] sm:$0xff]  ;;  %v306_v5 = vld [vmem:[%s279_s26 + $0x18] sm:$0xff]  ;;  %s285_s5 = scalar_lea.vmem %s643_s2, %s606_s20  ;;  %s291_s8 = scalar_lea.vmem %s644_s3, %s606_s20 }
  0x12   : > { %v317_v1 = vld [vmem:[%s273_s23 + $0x10] sm:$0xff]  ;;  %v315_v4 = vld [vmem:[%s273_s23] sm:$0xff]  ;;  %v318_v6 = vld [vmem:[%s273_s23 + $0x18] sm:$0xff]  ;;  %s301_s11 = scalar_lea.vmem %s645_s4, %s606_s20 }
  0x13   : > { %323 = vrot.lane.b32.xlu1 %v317_v1, %s561_s27  ;;  %v349_v3 = vmul.f32 %v317_v1, %v305_v0  ;;  %319 = vrot.lane.b32.xlu0 %v315_v4, %s561_s27  ;;  %v347_v7 = vmul.f32 %v315_v4, %v303_v2  ;;  %v350_v8 = vmul.f32 %v318_v6, %v306_v5  ;;  %v304_v9 = vld [vmem:[%s279_s26 + $0x8] sm:$0xff]  ;;  %v309_v16 = vld [vmem:[%s285_s5 + $0x10] sm:$0xff] }
  0x14   : > { %v316_v10 = vld [vmem:[%s273_s23 + $0x8] sm:$0xff]  ;;  %v310_v17 = vld [vmem:[%s285_s5 + $0x18] sm:$0xff]  ;;  %v307_v19 = vld [vmem:[%s285_s5] sm:$0xff] }
  0x15   : > { %v348_v11 = vmul.f32 %v316_v10, %v304_v9  ;;  %v308_v20 = vld [vmem:[%s285_s5 + $0x8] sm:$0xff]  ;;  %v311_v33 = vld [vmem:[%s291_s8] sm:$0xff]  ;;  %v314_v39 = vld [vmem:[%s291_s8 + $0x18] sm:$0xff] }
  0x16   : > { %v312_v41 = vld [vmem:[%s291_s8 + $0x8] sm:$0xff]  ;;  %v313_v42 = vld [vmem:[%s291_s8 + $0x10] sm:$0xff] }
  0x17   : > { %325 = vrot.lane.b32.xlu1 %v318_v6, %s561_s27  ;;  %321 = vrot.lane.b32.xlu0 %v316_v10, %s561_s27 }
  0x1b   : > { %340 = vrot.lane.b32.xlu1 %v318_v6, %s562_s28  ;;  %334 = vrot.lane.b32.xlu0 %v315_v4, %s562_s28 }
  0x1f   : > { %338 = vrot.lane.b32.xlu1 %v317_v1, %s562_s28  ;;  %336 = vrot.lane.b32.xlu0 %v316_v10, %s562_s28 }
  0x85   : > { %v324_v14 = vpop.permute.xlu1 %323  ;;  %v320_v15 = vpop.permute.xlu0 %319 }
  0x89   : > { %v326_v18 = vpop.permute.xlu1 %325  ;;  %v322_v23 = vpop.permute.xlu0 %321 }
  0x8a   : > { %v330_v21 = vsel %vm329_vm0, %v324_v14, %v326_v18  ;;  %v333_v22 = vsel %vm329_vm0, %v326_v18, %v320_v15  ;;  %v331_v26 = vsel %vm329_vm0, %v322_v23, %v324_v14  ;;  %v332_v27 = vsel %vm329_vm0, %v320_v15, %v322_v23 }
  0x8b   : > { %v353_v24 = vmul.f32 %v330_v21, %v309_v16  ;;  %v354_v25 = vmul.f32 %v333_v22, %v310_v17  ;;  %v351_v28 = vmul.f32 %v332_v27, %v307_v19  ;;  %v352_v29 = vmul.f32 %v331_v26, %v308_v20 }
  0x8d   : > { %v357_v30 = vadd.f32 %v353_v24, %v349_v3  ;;  %v358_v31 = vadd.f32 %v354_v25, %v350_v8  ;;  %v341_v32 = vpop.permute.xlu1 %340  ;;  %v355_v34 = vadd.f32 %v351_v28, %v347_v7  ;;  %v356_v35 = vadd.f32 %v352_v29, %v348_v11  ;;  %v335_v36 = vpop.permute.xlu0 %334 }
  0x8e   : > { %v346_v37 = vsel %vm342_vm1, %v341_v32, %v335_v36 }
  0x8f   : > { %v359_v38 = vmul.f32 %v346_v37, %v311_v33 }
  0x91   : > { %v339_v40 = vpop.permute.xlu1 %338  ;;  %v363_v43 = vadd.f32 %v359_v38, %v355_v34  ;;  %v337_v45 = vpop.permute.xlu0 %336 }
  0x92   : > { %v343_v44 = vsel %vm342_vm1, %v339_v40, %v341_v32  ;;  %v344_v47 = vsel %vm342_vm1, %v337_v45, %v339_v40  ;;  %v345_v48 = vsel %vm342_vm1, %v335_v36, %v337_v45 }
  0x93   : > { %v362_v46 = vmul.f32 %v343_v44, %v314_v39  ;;  %367 = vst [vmem:[%s301_s11] sm:$0xff] %v363_v43  ;;  %v360_v49 = vmul.f32 %v345_v48, %v312_v41  ;;  %v361_v50 = vmul.f32 %v344_v47, %v313_v42 }
  0x95   : > { %v366_v51 = vadd.f32 %v362_v46, %v358_v31  ;;  %v364_v52 = vadd.f32 %v360_v49, %v356_v35  ;;  %v365_v53 = vadd.f32 %v361_v50, %v357_v30 }
  0x97   : > { %368 = vst [vmem:[%s301_s11 + $0x8] sm:$0xff] %v364_v52  ;;  %369 = vst [vmem:[%s301_s11 + $0x10] sm:$0xff] %v365_v53 }
  0x98   : > { %370 = vst [vmem:[%s301_s11 + $0x18] sm:$0xff] %v366_v51 }
  0x99 PF: > { %s14_s17 = sadd.s32 1, %s559_s17   ;;  %s646_s15 = smov %s555_s16 }
  0x9a   : > { %p11_p5 = scmp.ge.s32.totalorder %s14_s17, 4   ;;  %s647_s16 = smov %s649_s18 }
  0x9c   :  { %13 = sbr.rel (!%p11_p5) target bundleno = 2 (0x2), region = 75 }

</bundles_post_ra>
